<compile_context>
chip_gen: v7x
topology: tpu7x:2x2x1
jax: 0.10.0
libtpu: 0.0.40
codegen_flags: <defaults>
</compile_context>

<pallas_src>
import jax
import jax.numpy as jnp
from jax.experimental import pallas as pl
from jax.experimental.pallas import tpu as pltpu


def _round_up(x: int, m: int) -> int:
    return (x + m - 1) // m * m


def _pick_row_tile(n: int) -> int:
    """~8 grid steps, tall MXU LHS tiles, multiple of 8, capped at 1024."""
    t = max(256, _round_up(max(n // 8, 1), 8))
    t = min(t, 1024)
    t = min(t, _round_up(n, 8))          # never larger than (padded) N
    return max(t, 8)


def _make_mlp_kernel(num_layers: int):
    """Fused bias-free MLP with ReLU between layers (unrolled over layers)."""

    def kernel(x_ref, *args):
        w_refs = args[:num_layers]
        o_ref = args[num_layers]
        h = x_ref[...]
        for l in range(num_layers):
            # MXU matmul, f32 accumulation regardless of input dtype.
            h = jnp.dot(h, w_refs[l][...], preferred_element_type=jnp.float32)
            if l != num_layers - 1:
                # ReLU, then cast back to the next weight's dtype so bf16
                # weights keep every matmul on the native bf16 MXU path.
                h = jnp.maximum(h, 0.0).astype(w_refs[l + 1].dtype)
        o_ref[...] = h.astype(o_ref.dtype)

    return kernel


def mlp_forward(x, weights, *, row_tile=None):
    """Fused MLP forward.

    Args:
      x: [N, dim_in] input (f32 or bf16).
      weights: list of num_layers arrays, weights[l] has shape [in_l, out_l]
               (transpose of the PyTorch nn.Linear weight; bias=False).
      row_tile: optional batch tile override (multiple of 8). Default adaptive.
    Returns:
      [N, dim_out] output in x.dtype.
    """
    num_layers = len(weights)
    n, dim_in = x.shape
    dim_out = weights[-1].shape[1]
    assert weights[0].shape[0] == dim_in

    if row_tile is None:
        row_tile = _pick_row_tile(n)
    row_tile = max(8, _round_up(int(row_tile), 8))
    num_steps = pl.cdiv(n, row_tile)     # partial last block handled by Pallas

    kernel = _make_mlp_kernel(num_layers)

    # x / out stream over the batch; weights are whole-array resident blocks.
    in_specs = [pl.BlockSpec((row_tile, dim_in), lambda i: (i, 0))]
    for w in weights:
        in_specs.append(pl.BlockSpec(w.shape, lambda i: (0, 0)))
    out_spec = pl.BlockSpec((row_tile, dim_out), lambda i: (i, 0))

    # Advisory cost hint from TRUE (unpadded) dims.
    out_itemsize = jnp.dtype(x.dtype).itemsize
    flops = 2 * n * sum(w.shape[0] * w.shape[1] for w in weights)
    bytes_accessed = (
        x.size * x.dtype.itemsize
        + sum(w.size * w.dtype.itemsize for w in weights)
        + n * dim_out * out_itemsize
    )
    cost = pl.CostEstimate(
        flops=int(flops), transcendentals=0, bytes_accessed=int(bytes_accessed))

    # VMEM residency guard (conservative: 2 buffers for every stream/weight,
    # plus f32 intermediate activations).
    max_feat = max([dim_in] + [w.shape[1] for w in weights])
    vmem_needed = (
        2 * sum(w.size * w.dtype.itemsize for w in weights)
        + 2 * row_tile * dim_in * x.dtype.itemsize
        + 2 * row_tile * dim_out * out_itemsize
        + 2 * row_tile * max_feat * 4
    )
    compiler_kwargs = {}
    if vmem_needed > 24 * 1024 * 1024:
        compiler_kwargs["vmem_limit_bytes"] = int(
            min(vmem_needed * 5 // 4, 64 * 1024 * 1024))

    return pl.pallas_call(
        kernel,
        out_shape=jax.ShapeDtypeStruct((n, dim_out), x.dtype),
        grid=(num_steps,),
        in_specs=in_specs,
        out_specs=out_spec,
        compiler_params=pltpu.CompilerParams(
            dimension_semantics=("parallel",), **compiler_kwargs),
        cost_estimate=cost,
    )(x, *weights)


def init_mlp_params(key, dim_in, dim_out, dim_hidden, num_layers,
                    dtype=jnp.float32):
    """Init mirroring nn.Linear(bias=False), weights stored [in, out]."""
    weights = []
    for l in range(num_layers):
        fan_in = dim_in if l == 0 else dim_hidden
        fan_out = dim_out if l == num_layers - 1 else dim_hidden
        key, sub = jax.random.split(key)
        bound = 1.0 / float(fan_in) ** 0.5   # PyTorch default Linear init bound
        w = jax.random.uniform(sub, (fan_in, fan_out),
                               minval=-bound, maxval=bound,
                               dtype=jnp.float32).astype(dtype)
        weights.append(w)
    return weights


def mlp_reference(x, weights):
    """Pure-JAX reference mirroring the kernel's dtype handling."""
    num_layers = len(weights)
    h = x
    for l, w in enumerate(weights):
        h = jnp.dot(h, w, preferred_element_type=jnp.float32)
        if l != num_layers - 1:
            h = jnp.maximum(h, 0.0).astype(weights[l + 1].dtype)
    return h.astype(x.dtype)


if __name__ == "__main__":
    key = jax.random.PRNGKey(0)

    # ---- f32 path: small NeRF-style MLP, N not a multiple of row_tile ------
    dim_in, dim_out, dim_hidden, num_layers = 16, 8, 32, 3
    n = 300                                  # exercises the partial last block
    key, kx, kw = jax.random.split(key, 3)
    x = jax.random.normal(kx, (n, dim_in), dtype=jnp.float32)
    weights = init_mlp_params(kw, dim_in, dim_out, dim_hidden, num_layers,
                              dtype=jnp.float32)

    out = jax.block_until_ready(mlp_forward(x, weights))
    ref = mlp_reference(x, weights)
    assert out.shape == (n, dim_out), out.shape
    assert jnp.allclose(out, ref, atol=1e-5, rtol=1e-5), \
        float(jnp.max(jnp.abs(out - ref)))

    # ---- bf16 path: native MXU inputs, f32 accumulate, multi-step grid -----
    dim_in2, dim_out2, dim_hidden2, num_layers2 = 32, 16, 64, 4
    n2 = 2048                                # adaptive row_tile=256 -> grid=8
    key, kx2, kw2 = jax.random.split(key, 3)
    x2 = jax.random.normal(kx2, (n2, dim_in2), dtype=jnp.float32
                           ).astype(jnp.bfloat16)
    weights2 = init_mlp_params(kw2, dim_in2, dim_out2, dim_hidden2, num_layers2,
                               dtype=jnp.bfloat16)

    out2 = jax.block_until_ready(mlp_forward(x2, weights2))
    ref2 = mlp_reference(x2, weights2)
    assert out2.shape == (n2, dim_out2), out2.shape
    err = float(jnp.max(jnp.abs(out2.astype(jnp.float32)
                                - ref2.astype(jnp.float32))))
    assert err < 5e-2, err

    print("KERNEL_OK")
</pallas_src>

<mosaic_0001>
module attributes {stable_mosaic.version = 11 : i64} {
  func.func @kernel(%arg0: i32, %arg1: memref<256x16xf32, #tpu.memory_space<vmem>>, %arg2: memref<16x32xf32, #tpu.memory_space<vmem>>, %arg3: memref<32x32xf32, #tpu.memory_space<vmem>>, %arg4: memref<32x8xf32, #tpu.memory_space<vmem>>, %arg5: memref<256x8xf32, #tpu.memory_space<vmem>>) attributes {dimension_semantics = [#tpu.dimension_semantics<parallel>], iteration_bounds = array<i64: 2>, scalar_prefetch = 0 : i64, scratch_operands = 0 : i64, tpu.core_type = #tpu.core_type<tc>, window_params = [{transform_indices = @transform_0, window_bounds = array<i64: 256, 16>}, {pipeline_mode = #tpu.pipeline_mode<synchronous>, transform_indices = @transform_1, window_bounds = array<i64: 16, 32>}, {pipeline_mode = #tpu.pipeline_mode<synchronous>, transform_indices = @transform_2, window_bounds = array<i64: 32, 32>}, {pipeline_mode = #tpu.pipeline_mode<synchronous>, transform_indices = @transform_3, window_bounds = array<i64: 32, 8>}, {transform_indices = @transform_4, window_bounds = array<i64: 256, 8>}]} {
    %c0 = arith.constant 0 : index
    %c0_0 = arith.constant 0 : index
    %0 = vector.load %arg1[%c0, %c0_0] : memref<256x16xf32, #tpu.memory_space<vmem>>, vector<256x16xf32>
    %c0_1 = arith.constant 0 : index
    %c0_2 = arith.constant 0 : index
    %1 = vector.load %arg2[%c0_1, %c0_2] : memref<16x32xf32, #tpu.memory_space<vmem>>, vector<16x32xf32>
    %cst = arith.constant dense<0.000000e+00> : vector<256x32xf32>
    %2 = tpu.matmul %0, %1, %cst {dimension_numbers = #tpu.dot_dimension_numbers<[1], [0], [0], [1], [0, 0, 1, 1], [], []>} : vector<256x16xf32>, vector<16x32xf32>, vector<256x32xf32> -> vector<256x32xf32>
    %cst_3 = arith.constant 0.000000e+00 : f32
    %3 = vector.broadcast %cst_3 : f32 to vector<256x32xf32>
    %4 = arith.maximumf %2, %3 : vector<256x32xf32>
    %c0_4 = arith.constant 0 : index
    %c0_5 = arith.constant 0 : index
    %5 = vector.load %arg3[%c0_4, %c0_5] : memref<32x32xf32, #tpu.memory_space<vmem>>, vector<32x32xf32>
    %cst_6 = arith.constant dense<0.000000e+00> : vector<256x32xf32>
    %6 = tpu.matmul %4, %5, %cst_6 {dimension_numbers = #tpu.dot_dimension_numbers<[1], [0], [0], [1], [0, 0, 1, 1], [], []>} : vector<256x32xf32>, vector<32x32xf32>, vector<256x32xf32> -> vector<256x32xf32>
    %cst_7 = arith.constant 0.000000e+00 : f32
    %7 = vector.broadcast %cst_7 : f32 to vector<256x32xf32>
    %8 = arith.maximumf %6, %7 : vector<256x32xf32>
    %c0_8 = arith.constant 0 : index
    %c0_9 = arith.constant 0 : index
    %9 = vector.load %arg4[%c0_8, %c0_9] : memref<32x8xf32, #tpu.memory_space<vmem>>, vector<32x8xf32>
    %cst_10 = arith.constant dense<0.000000e+00> : vector<256x8xf32>
    %10 = tpu.matmul %8, %9, %cst_10 {dimension_numbers = #tpu.dot_dimension_numbers<[1], [0], [0], [1], [0, 0, 1, 1], [], []>} : vector<256x32xf32>, vector<32x8xf32>, vector<256x8xf32> -> vector<256x8xf32>
    %c0_11 = arith.constant 0 : index
    %c0_12 = arith.constant 0 : index
    %11 = vector.load %arg5[%c0_11, %c0_12] : memref<256x8xf32, #tpu.memory_space<vmem>>, vector<256x8xf32>
    tpu.vector_store %arg5[%c0_11, %c0_12], %10 {strides = array<i32>} : memref<256x8xf32, #tpu.memory_space<vmem>>, vector<256x8xf32>,
    return
  }
  func.func @transform_0(%arg0: i32) -> (i32, i32) {
    %c0_i32 = arith.constant 0 : i32
    %c0_i32_0 = arith.constant 0 : i32
    return %arg0, %c0_i32 : i32, i32
  }
  func.func @transform_1(%arg0: i32) -> (i32, i32) {
    %c0_i32 = arith.constant 0 : i32
    %c0_i32_0 = arith.constant 0 : i32
    %c0_i32_1 = arith.constant 0 : i32
    return %c0_i32, %c0_i32_0 : i32, i32
  }
  func.func @transform_2(%arg0: i32) -> (i32, i32) {
    %c0_i32 = arith.constant 0 : i32
    %c0_i32_0 = arith.constant 0 : i32
    %c0_i32_1 = arith.constant 0 : i32
    return %c0_i32, %c0_i32_0 : i32, i32
  }
  func.func @transform_3(%arg0: i32) -> (i32, i32) {
    %c0_i32 = arith.constant 0 : i32
    %c0_i32_0 = arith.constant 0 : i32
    %c0_i32_1 = arith.constant 0 : i32
    return %c0_i32, %c0_i32_0 : i32, i32
  }
  func.func @transform_4(%arg0: i32) -> (i32, i32) {
    %c0_i32 = arith.constant 0 : i32
    %c0_i32_0 = arith.constant 0 : i32
    return %arg0, %c0_i32 : i32, i32
  }
}

</mosaic_0001>

<bundles_post_ra>
// kernel: tpu_custom_call.1
= control target key start
LH: loop header
LB: loop body
LE: loop exit
PB: predicated region body
PF: predicated region fallthrough
CT: control target
= control target key end

     0   :  { %s2278_s15 = smov 0   ;;  %s2280_s16 = smov 0   ;;  %s2681_s0 = inlined_call_operand.vmem [shape: f32[300,16], index: 0, kind: input, shape index: {}]   ;;  %s2682_s1 = inlined_call_operand.vmem [shape: f32[16,32], index: 1, kind: input, shape index: {}]   ;;  %s2683_s2 = inlined_call_operand.vmem [shape: f32[32,32], index: 2, kind: input, shape index: {}]   ;;  %s2684_s3 = inlined_call_operand.vmem [shape: f32[32,8], index: 3, kind: input, shape index: {}]   ;;  %s2685_s4 = inlined_call_operand.vmem [shape: f32[300,8], index: 4, kind: output, shape index: {}]  }
   0x1   :  { %s2282_s17 = smov 0  }
   0x2 LB: > { %s2291_s18 = sadd.s32 4294967295, %s2219_s17   ;;  %s2293_s19 = sadd.s32 1, %s2219_s17   ;;  %s2219_s17 = sphi %s2282_s17, %s2694_s17   ;;  %s2215_s16 = sphi %s2280_s16, %s2693_s16   ;;  %s2211_s15 = sphi %s2278_s15, %s2692_s15  }
   0x3   : > { %s107_s20 = ssub.s32 %s2219_s17, %s2293_s19  ;;  %s110_s21 = sadd.s32 1, %s2215_s16 }
   0x4   : > { %p108_p0 = scmp.eq.s32.totalorder %s107_s20, 0  ;;  %p120_p1 = scmp.ne.s32.totalorder %s2215_s16, %s2211_s15 }
   0x5   : > { %p121_p2 = scmp.eq.s32.totalorder %s2291_s18, 1  ;;  %p1665_p3 = scmp.ge.s32.totalorder %s2219_s17, 1 }
   0x6   : > { %s2301_s22 = scalar_select %p108_p0, %s2215_s16, %s110_s21  }
   0x7   : > { %p2303_p4 = por %p121_p2, %p120_p1  ;;  %p171_p5 = scmp.lt.s32.totalorder %s2219_s17, 3 }
   0x9   : > { %p172_p6 = pnand %p1665_p3, %p171_p5 }
   0xa   : > { %v251_v0 = vld [vmem:[%s2682_s1] sm:$0xff] (!%p172_p6)  ;;  %v252_v1 = vld [vmem:[%s2682_s1 + $0x8] sm:$0xff] (!%p172_p6)  ;;  %s2314_s28 = sshll.u32 (!%p172_p6), %s2291_s18, 5  ;;  %vm253_vm0 = vcmask (!%p172_p6), 130048   ;;  %v609_v9 = vld [vmem:[%s2683_s2 + $0x10] sm:$0xff] (!%p172_p6)  ;;  %vm611_vm1 = vcmask (!%p172_p6), 261120  }
   0xb   : > { %175 = sbr.rel (%p172_p6) target bundleno = 786 (0x312), region = 36  ;;  %v607_v2 = vld [vmem:[%s2683_s2] sm:$0xff] (!%p172_p6)  ;;  %v2055_v3 = vpack.c.bf16 (!%p172_p6), %v252_v1, %v251_v0  ;;  %p205_p7 = scmp.lt.s32.totalorder (!%p172_p6), %s2314_s28, 37  ;;  %v608_v4 = vld [vmem:[%s2683_s2 + $0x8] sm:$0xff] (!%p172_p6)  ;;  %v610_v10 = vld [vmem:[%s2683_s2 + $0x18] sm:$0xff] (!%p172_p6)  ;;  %vm1290_vm2 = vcmask (!%p172_p6), 64512  }
   0xc   : > { %v2059_v5 = vpack.c.bf16 (!%p172_p6), %v608_v4, %v607_v2  ;;  %v2063_v15 = vpack.c.bf16 (!%p172_p6), %v610_v10, %v609_v9  ;;  %v965_v41 = vld [vmem:[%s2684_s3] sm:$0xff] (!%p172_p6)  ;;  %v966_v42 = vld [vmem:[%s2684_s3 + $0x8] sm:$0xff] (!%p172_p6)  ;;  %v967_v43 = vld [vmem:[%s2684_s3 + $0x10] sm:$0xff] (!%p172_p6)  ;;  %s197_s5 = sand.u32 (!%p172_p6), 1, %s2211_s15  }
   0xd   : > { %2056 = vmatprep.subr.bf16.mxu0 (!%p172_p6), %v2055_v3  ;;  %2075 = vmatprep.subr.bf16.mxu1 (!%p172_p6), %v2055_v3  ;;  %v2067_v44 = vpack.c.bf16 (!%p172_p6), %v966_v42, %v965_v41  ;;  %v968_v45 = vld [vmem:[%s2684_s3 + $0x18] sm:$0xff] (!%p172_p6)  ;;  %s1666_s6 = sshll.u32 (!%p172_p6), %s197_s5, 8 }
   0xe   : > { %2058 = vmatpush3.bf16.msra.mxu0 (!%p172_p6), %v2055_v3  ;;  %2076 = vmatpush3.bf16.msra.mxu1 (!%p172_p6), %v2055_v3  ;;  %v2071_v46 = vpack.c.bf16 (!%p172_p6), %v968_v45, %v967_v43 }
   0xf   : > { %2060 = vmatprep.subr.bf16.mxu1 (!%p172_p6), %v2059_v5  ;;  %2068 = vmatprep.subr.bf16.mxu0 (!%p172_p6), %v2067_v44 }
  0x12   : > { %s206_s7 = scalar_select %p205_p7, %s2314_s28, 37 }
  0x13   : > { %s1331_s15 = ssub.s32 (%p2303_p4), 38, %s2314_s28 }
  0x14   : > { %s1668_s8 = sshll.u32 %s206_s7, 3  ;;  %s2476_s7 = scalar_lea.vmem [#allocation2], %s1666_s6  }
  0x15   : > { %s2327_s11 = scalar_lea.vmem %s2681_s0, %s1668_s8  ;;  %s1782_s8 = sshll.u32 (%p2303_p4), %s2291_s18, 8 }
  0x16   : > { %v219_v6 = vld [vmem:[%s2327_s11] sm:$0xff]  ;;  %v220_v7 = vld [vmem:[%s2327_s11 + $0x8] sm:$0xff]  ;;  %v221_v8 = vld [vmem:[%s2327_s11 + $0x10] sm:$0xff]  ;;  %p1332_p8 = scmp.lt.s32.totalorder (%p2303_p4), %s1331_s15, 32 }
  0x17   : > { %1895 = vmatprep.mubr.msk.f32.mxu0 %vm253_vm0, %v219_v6  ;;  %v222_v11 = vld [vmem:[%s2327_s11 + $0x18] sm:$0xff]  ;;  %v223_v12 = vld [vmem:[%s2327_s11 + $0x20] sm:$0xff]  ;;  %v236_v14 = vld [vmem:[%s2327_s11 + $0x88] sm:$0xff] }
  0x18   : > { %1896 = vmatmul.mubr.msk.f32.vlgmr.msra.gmra.mrb[0].mxu0 %vm253_vm0, %v220_v7  ;;  %v235_v13 = vld [vmem:[%s2327_s11 + $0x80] sm:$0xff]  ;;  %v237_v16 = vld [vmem:[%s2327_s11 + $0x90] sm:$0xff]  ;;  %v224_v17 = vld [vmem:[%s2327_s11 + $0x28] sm:$0xff] }
  0x19   : > { %1898 = vmatprep.mubr.msk.f32.mxu0 %vm253_vm0, %v221_v8  ;;  %1919 = vmatprep.mubr.msk.f32.mxu1 %vm253_vm0, %v235_v13  ;;  %v225_v18 = vld [vmem:[%s2327_s11 + $0x30] sm:$0xff]  ;;  %v238_v19 = vld [vmem:[%s2327_s11 + $0x98] sm:$0xff]  ;;  %v239_v20 = vld [vmem:[%s2327_s11 + $0xa0] sm:$0xff] }
  0x1a   : > { %1920 = vmatmul.mubr.msk.f32.vlgmr.msra.gmra.mrb[0].mxu1 %vm253_vm0, %v236_v14  ;;  %v226_v21 = vld [vmem:[%s2327_s11 + $0x38] sm:$0xff]  ;;  %v227_v22 = vld [vmem:[%s2327_s11 + $0x40] sm:$0xff]  ;;  %v240_v23 = vld [vmem:[%s2327_s11 + $0xa8] sm:$0xff]  ;;  %2070 = vmatpush3.bf16.msra.mxu0 %v2067_v44 }
  0x1b   : > { %1922 = vmatprep.mubr.msk.f32.mxu1 %vm253_vm0, %v237_v16  ;;  %2062 = vmatpush3.bf16.msra.mxu1 %v2059_v5  ;;  %v241_v24 = vld [vmem:[%s2327_s11 + $0xb0] sm:$0xff]  ;;  %v228_v25 = vld [vmem:[%s2327_s11 + $0x48] sm:$0xff]  ;;  %v242_v27 = vld [vmem:[%s2327_s11 + $0xb8] sm:$0xff] }
  0x1c   : > { %1899 = vmatmul.mubr.msk.f32.gmra.mrb[2].mxu0 %vm253_vm0, %v222_v11  ;;  %2064 = vmatprep.subr.bf16.mxu1 %v2063_v15  ;;  %v229_v26 = vld [vmem:[%s2327_s11 + $0x50] sm:$0xff]  ;;  %v243_v28 = vld [vmem:[%s2327_s11 + $0xc0] sm:$0xff]  ;;  %v230_v29 = vld [vmem:[%s2327_s11 + $0x58] sm:$0xff] }
  0x1d   : > { %1901 = vmatprep.mubr.msk.f32.mxu0 %vm253_vm0, %v223_v12  ;;  %v231_v30 = vld [vmem:[%s2327_s11 + $0x60] sm:$0xff]  ;;  %v244_v31 = vld [vmem:[%s2327_s11 + $0xc8] sm:$0xff]  ;;  %v245_v32 = vld [vmem:[%s2327_s11 + $0xd0] sm:$0xff]  ;;  %2072 = vmatprep.subr.bf16.mxu0 %v2071_v46 }
  0x1e   : > { %1923 = vmatmul.mubr.msk.f32.gmra.mrb[2].mxu1 %vm253_vm0, %v238_v19  ;;  %v232_v33 = vld [vmem:[%s2327_s11 + $0x68] sm:$0xff]  ;;  %v233_v34 = vld [vmem:[%s2327_s11 + $0x70] sm:$0xff]  ;;  %v246_v35 = vld [vmem:[%s2327_s11 + $0xd8] sm:$0xff]  ;;  %2074 = vmatpush3.bf16.msra.mxu0 %v2071_v46 }
  0x1f   : > { %1925 = vmatprep.mubr.msk.f32.mxu1 %vm253_vm0, %v239_v20  ;;  %2066 = vmatpush3.bf16.msra.mxu1 %v2063_v15  ;;  %v247_v36 = vld [vmem:[%s2327_s11 + $0xe0] sm:$0xff]  ;;  %v234_v37 = vld [vmem:[%s2327_s11 + $0x78] sm:$0xff]  ;;  %v248_v38 = vld [vmem:[%s2327_s11 + $0xe8] sm:$0xff] }
  0x20   : > { %1902 = vmatmul.mubr.msk.f32.gmra.mrb[4].mxu0 %vm253_vm0, %v224_v17  ;;  %v249_v39 = vld [vmem:[%s2327_s11 + $0xf0] sm:$0xff]  ;;  %v250_v40 = vld [vmem:[%s2327_s11 + $0xf8] sm:$0xff]  ;;  %s2549_s11 = scalar_lea.vmem (%p2303_p4), %s2685_s4, %s1782_s8  }
  0x21   : > { %1904 = vmatprep.mubr.msk.f32.mxu0 %vm253_vm0, %v225_v18 }
  0x22   : > { %1926 = vmatmul.mubr.msk.f32.gmra.mrb[4].mxu1 %vm253_vm0, %v240_v23 }
  0x23   : > { %1928 = vmatprep.mubr.msk.f32.mxu1 %vm253_vm0, %v241_v24 }
  0x24   : > { %1905 = vmatmul.mubr.msk.f32.gmra.mrb[6].mxu0 %vm253_vm0, %v226_v21 }
  0x25   : > { %1907 = vmatprep.mubr.msk.f32.mxu0 %vm253_vm0, %v227_v22 }
  0x26   : > { %1929 = vmatmul.mubr.msk.f32.gmra.mrb[6].mxu1 %vm253_vm0, %v242_v27 }
  0x27   : > { %1931 = vmatprep.mubr.msk.f32.mxu1 %vm253_vm0, %v243_v28 }
  0x28   : > { %1908 = vmatmul.mubr.msk.f32.gmra.mrb[8].mxu0 %vm253_vm0, %v228_v25 }
  0x29   : > { %1910 = vmatprep.mubr.msk.f32.mxu0 %vm253_vm0, %v229_v26 }
  0x2a   : > { %1932 = vmatmul.mubr.msk.f32.gmra.mrb[8].mxu1 %vm253_vm0, %v244_v31 }
  0x2b   : > { %1934 = vmatprep.mubr.msk.f32.mxu1 %vm253_vm0, %v245_v32 }
  0x2c   : > { %1911 = vmatmul.mubr.msk.f32.gmra.mrb[10].mxu0 %vm253_vm0, %v230_v29 }
  0x2d   : > { %1913 = vmatprep.mubr.msk.f32.mxu0 %vm253_vm0, %v231_v30 }
  0x2e   : > { %1935 = vmatmul.mubr.msk.f32.gmra.mrb[10].mxu1 %vm253_vm0, %v246_v35 }
  0x2f   : > { %1937 = vmatprep.mubr.msk.f32.mxu1 %vm253_vm0, %v247_v36 }
  0x30   : > { %1914 = vmatmul.mubr.msk.f32.gmra.mrb[12].mxu0 %vm253_vm0, %v232_v33 }
  0x31   : > { %1916 = vmatprep.mubr.msk.f32.mxu0 %vm253_vm0, %v233_v34 }
  0x32   : > { %1938 = vmatmul.mubr.msk.f32.gmra.mrb[12].mxu1 %vm253_vm0, %v248_v38 }
  0x33   : > { %1940 = vmatprep.mubr.msk.f32.mxu1 %vm253_vm0, %v249_v39 }
  0x34   : > { %1917 = vmatmul.mubr.msk.f32.gmra.mrb[14].mxu0 %vm253_vm0, %v234_v37 }
  0x36   : > { %1941 = vmatmul.mubr.msk.f32.gmra.mrb[14].mxu1 %vm253_vm0, %v250_v40 }
  0xeb   : > { %v1897_v47 = vpop.f32.mrb[0].mxu0 }
  0xec   : > { %v416_v48 = vpop.f32.mrb[1].mxu0  ;;  %v576_v50 = vmax.f32 %v1897_v47, 0.0 }
  0xed   : > { %v575_v49 = vmax.f32 %v416_v48, 0.0  ;;  %v1921_v53 = vpop.f32.mrb[0].mxu1 }
  0xee   : > { %v496_v55 = vpop.f32.mrb[1].mxu1  ;;  %v592_v33 = vmax.f32 %v1921_v53, 0.0 }
  0xef   : > { %v1900_v51 = vpop.f32.mrb[2].mxu0  ;;  %1951 = vmatprep.mubr.msk.f32.mxu1 %vm611_vm1, %v575_v49  ;;  %v591_v27 = vmax.f32 %v496_v55, 0.0 }
  0xf0   : > { %v426_v52 = vpop.f32.mrb[3].mxu0  ;;  %1952 = vmatmul.mubr.msk.f32.vlgmr.msra.gmra.mrb[16].mxu1 %vm611_vm1, %v576_v50  ;;  %v578_v56 = vmax.f32 %v1900_v51, 0.0 }
  0xf1   : > { %v577_v54 = vmax.f32 %v426_v52, 0.0  ;;  %v1924_v59 = vpop.f32.mrb[2].mxu1 }
  0xf2   : > { %v506_v61 = vpop.f32.mrb[3].mxu1  ;;  %v594_v35 = vmax.f32 %v1924_v59, 0.0 }
  0xf3   : > { %v1903_v57 = vpop.f32.mrb[4].mxu0  ;;  %1954 = vmatprep.mubr.msk.f32.mxu1 %vm611_vm1, %v577_v54  ;;  %v593_v31 = vmax.f32 %v506_v61, 0.0 }
  0xf4   : > { %v436_v58 = vpop.f32.mrb[5].mxu0  ;;  %1955 = vmatmul.mubr.msk.f32.gmra.mrb[18].mxu1 %vm611_vm1, %v578_v56  ;;  %v580_v62 = vmax.f32 %v1903_v57, 0.0 }
  0xf5   : > { %v579_v60 = vmax.f32 %v436_v58, 0.0  ;;  %v1927_v1 = vpop.f32.mrb[4].mxu1 }
  0xf6   : > { %v516_v3 = vpop.f32.mrb[5].mxu1  ;;  %v596_v37 = vmax.f32 %v1927_v1, 0.0 }
  0xf7   : > { %v1906_v63 = vpop.f32.mrb[6].mxu0  ;;  %1957 = vmatprep.mubr.msk.f32.mxu1 %vm611_vm1, %v579_v60  ;;  %v595_v34 = vmax.f32 %v516_v3, 0.0 }
  0xf8   : > { %v446_v0 = vpop.f32.mrb[7].mxu0  ;;  %1958 = vmatmul.mubr.msk.f32.gmra.mrb[20].mxu1 %vm611_vm1, %v580_v62  ;;  %v582_v4 = vmax.f32 %v1906_v63, 0.0 }
  0xf9   : > { %v581_v2 = vmax.f32 %v446_v0, 0.0  ;;  %v1930_v7 = vpop.f32.mrb[6].mxu1 }
  0xfa   : > { %v526_v9 = vpop.f32.mrb[7].mxu1  ;;  %v598_v39 = vmax.f32 %v1930_v7, 0.0 }
  0xfb   : > { %v1909_v5 = vpop.f32.mrb[8].mxu0  ;;  %1960 = vmatprep.mubr.msk.f32.mxu1 %vm611_vm1, %v581_v2  ;;  %v597_v36 = vmax.f32 %v526_v9, 0.0 }
  0xfc   : > { %v456_v6 = vpop.f32.mrb[9].mxu0  ;;  %1961 = vmatmul.mubr.msk.f32.gmra.mrb[22].mxu1 %vm611_vm1, %v582_v4  ;;  %v584_v10 = vmax.f32 %v1909_v5, 0.0 }
  0xfd   : > { %v583_v8 = vmax.f32 %v456_v6, 0.0  ;;  %v1933_v13 = vpop.f32.mrb[8].mxu1 }
  0xfe   : > { %v536_v15 = vpop.f32.mrb[9].mxu1  ;;  %v600_v41 = vmax.f32 %v1933_v13, 0.0 }
  0xff   : > { %v1912_v11 = vpop.f32.mrb[10].mxu0  ;;  %1963 = vmatprep.mubr.msk.f32.mxu1 %vm611_vm1, %v583_v8  ;;  %v599_v38 = vmax.f32 %v536_v15, 0.0 }
 0x100   : > { %v466_v12 = vpop.f32.mrb[11].mxu0  ;;  %1964 = vmatmul.mubr.msk.f32.gmra.mrb[24].mxu1 %vm611_vm1, %v584_v10  ;;  %v586_v16 = vmax.f32 %v1912_v11, 0.0 }
 0x101   : > { %v585_v14 = vmax.f32 %v466_v12, 0.0  ;;  %v1936_v19 = vpop.f32.mrb[10].mxu1 }
 0x102   : > { %v546_v21 = vpop.f32.mrb[11].mxu1  ;;  %v602_v43 = vmax.f32 %v1936_v19, 0.0 }
 0x103   : > { %v1915_v17 = vpop.f32.mrb[12].mxu0  ;;  %1966 = vmatprep.mubr.msk.f32.mxu1 %vm611_vm1, %v585_v14  ;;  %v601_v40 = vmax.f32 %v546_v21, 0.0 }
 0x104   : > { %v476_v18 = vpop.f32.mrb[13].mxu0  ;;  %1967 = vmatmul.mubr.msk.f32.gmra.mrb[26].mxu1 %vm611_vm1, %v586_v16  ;;  %v588_v22 = vmax.f32 %v1915_v17, 0.0 }
 0x105   : > { %v587_v20 = vmax.f32 %v476_v18, 0.0  ;;  %v1939_v25 = vpop.f32.mrb[12].mxu1 }
 0x106   : > { %v556_v28 = vpop.f32.mrb[13].mxu1  ;;  %v604_v45 = vmax.f32 %v1939_v25, 0.0 }
 0x107   : > { %v1918_v23 = vpop.f32.mrb[14].mxu0  ;;  %1969 = vmatprep.mubr.msk.f32.mxu1 %vm611_vm1, %v587_v20  ;;  %v603_v42 = vmax.f32 %v556_v28, 0.0 }
 0x108   : > { %v486_v24 = vpop.f32.mrb[15].mxu0  ;;  %1970 = vmatmul.mubr.msk.f32.gmra.mrb[28].mxu1 %vm611_vm1, %v588_v22  ;;  %v590_v29 = vmax.f32 %v1918_v23, 0.0 }
 0x109   : > { %v589_v26 = vmax.f32 %v486_v24, 0.0  ;;  %v1942_v30 = vpop.f32.mrb[14].mxu1 }
 0x10a   : > { %v566_v32 = vpop.f32.mrb[15].mxu1  ;;  %v606_v46 = vmax.f32 %v1942_v30, 0.0 }
 0x10b   : > { %1972 = vmatprep.mubr.msk.f32.mxu1 %vm611_vm1, %v589_v26  ;;  %v605_v44 = vmax.f32 %v566_v32, 0.0 }
 0x10c   : > { %1973 = vmatmul.mubr.msk.f32.gmra.mrb[30].mxu1 %vm611_vm1, %v590_v29 }
 0x10d   : > { %1975 = vmatprep.mubr.msk.f32.mxu1 %vm611_vm1, %v591_v27 }
 0x110   : > { %1976 = vmatmul.mubr.msk.f32.gmra.mrb[32].mxu1 %vm611_vm1, %v592_v33 }
 0x111   : > { %1978 = vmatprep.mubr.msk.f32.mxu1 %vm611_vm1, %v593_v31 }
 0x114   : > { %1979 = vmatmul.mubr.msk.f32.gmra.mrb[34].mxu1 %vm611_vm1, %v594_v35 }
 0x115   : > { %1981 = vmatprep.mubr.msk.f32.mxu1 %vm611_vm1, %v595_v34 }
 0x118   : > { %1982 = vmatmul.mubr.msk.f32.gmra.mrb[36].mxu1 %vm611_vm1, %v596_v37 }
 0x119   : > { %1984 = vmatprep.mubr.msk.f32.mxu1 %vm611_vm1, %v597_v36 }
 0x11c   : > { %1985 = vmatmul.mubr.msk.f32.gmra.mrb[38].mxu1 %vm611_vm1, %v598_v39 }
 0x11d   : > { %1987 = vmatprep.mubr.msk.f32.mxu1 %vm611_vm1, %v599_v38 }
 0x120   : > { %1988 = vmatmul.mubr.msk.f32.gmra.mrb[40].mxu1 %vm611_vm1, %v600_v41 }
 0x121   : > { %1990 = vmatprep.mubr.msk.f32.mxu1 %vm611_vm1, %v601_v40 }
 0x124   : > { %1991 = vmatmul.mubr.msk.f32.gmra.mrb[42].mxu1 %vm611_vm1, %v602_v43 }
 0x125   : > { %1993 = vmatprep.mubr.msk.f32.mxu1 %vm611_vm1, %v603_v42 }
 0x128   : > { %1994 = vmatmul.mubr.msk.f32.gmra.mrb[44].mxu1 %vm611_vm1, %v604_v45 }
 0x129   : > { %1996 = vmatprep.mubr.msk.f32.mxu1 %vm611_vm1, %v605_v44 }
 0x12c   : > { %1997 = vmatmul.mubr.msk.f32.gmra.mrb[46].mxu1 %vm611_vm1, %v606_v46 }
 0x1c3   : > { %v1953_v47 = vpop.f32.mrb[16].mxu1 }
 0x1c4   : > { %v774_v48 = vpop.f32.mrb[17].mxu1  ;;  %v934_v50 = vmax.f32 %v1953_v47, 0.0 }
 0x1c5   : > { %v933_v49 = vmax.f32 %v774_v48, 0.0 }
 0x1c7   : > { %v1956_v51 = vpop.f32.mrb[18].mxu1  ;;  %2007 = vmatprep.mubr.msk.f32.mxu0 %vm611_vm1, %v933_v49 }
 0x1c8   : > { %v784_v52 = vpop.f32.mrb[19].mxu1  ;;  %2008 = vmatmul.mubr.msk.f32.vlgmr.msra.gmra.mrb[16].mxu0 %vm611_vm1, %v934_v50  ;;  %v936_v54 = vmax.f32 %v1956_v51, 0.0 }
 0x1c9   : > { %v935_v53 = vmax.f32 %v784_v52, 0.0 }
 0x1cb   : > { %v1959_v55 = vpop.f32.mrb[20].mxu1  ;;  %2010 = vmatprep.mubr.msk.f32.mxu0 %vm611_vm1, %v935_v53 }
 0x1cc   : > { %v794_v56 = vpop.f32.mrb[21].mxu1  ;;  %2011 = vmatmul.mubr.msk.f32.gmra.mrb[18].mxu0 %vm611_vm1, %v936_v54  ;;  %v938_v58 = vmax.f32 %v1959_v55, 0.0 }
 0x1cd   : > { %v937_v57 = vmax.f32 %v794_v56, 0.0 }
 0x1cf   : > { %v1962_v59 = vpop.f32.mrb[22].mxu1  ;;  %2013 = vmatprep.mubr.msk.f32.mxu0 %vm611_vm1, %v937_v57 }
 0x1d0   : > { %v804_v60 = vpop.f32.mrb[23].mxu1  ;;  %2014 = vmatmul.mubr.msk.f32.gmra.mrb[20].mxu0 %vm611_vm1, %v938_v58  ;;  %v940_v62 = vmax.f32 %v1962_v59, 0.0 }
 0x1d1   : > { %v939_v61 = vmax.f32 %v804_v60, 0.0 }
 0x1d3   : > { %v1965_v63 = vpop.f32.mrb[24].mxu1  ;;  %2016 = vmatprep.mubr.msk.f32.mxu0 %vm611_vm1, %v939_v61 }
 0x1d4   : > { %v814_v0 = vpop.f32.mrb[25].mxu1  ;;  %2017 = vmatmul.mubr.msk.f32.gmra.mrb[22].mxu0 %vm611_vm1, %v940_v62  ;;  %v942_v2 = vmax.f32 %v1965_v63, 0.0 }
 0x1d5   : > { %v941_v1 = vmax.f32 %v814_v0, 0.0 }
 0x1d7   : > { %v1968_v3 = vpop.f32.mrb[26].mxu1  ;;  %2019 = vmatprep.mubr.msk.f32.mxu0 %vm611_vm1, %v941_v1 }
 0x1d8   : > { %v824_v4 = vpop.f32.mrb[27].mxu1  ;;  %2020 = vmatmul.mubr.msk.f32.gmra.mrb[24].mxu0 %vm611_vm1, %v942_v2  ;;  %v944_v6 = vmax.f32 %v1968_v3, 0.0 }
 0x1d9   : > { %v943_v5 = vmax.f32 %v824_v4, 0.0 }
 0x1db   : > { %v1971_v7 = vpop.f32.mrb[28].mxu1  ;;  %2022 = vmatprep.mubr.msk.f32.mxu0 %vm611_vm1, %v943_v5 }
 0x1dc   : > { %v834_v8 = vpop.f32.mrb[29].mxu1  ;;  %2023 = vmatmul.mubr.msk.f32.gmra.mrb[26].mxu0 %vm611_vm1, %v944_v6  ;;  %v946_v10 = vmax.f32 %v1971_v7, 0.0 }
 0x1dd   : > { %v945_v9 = vmax.f32 %v834_v8, 0.0 }
 0x1df   : > { %v1974_v11 = vpop.f32.mrb[30].mxu1  ;;  %2025 = vmatprep.mubr.msk.f32.mxu0 %vm611_vm1, %v945_v9 }
 0x1e0   : > { %v844_v12 = vpop.f32.mrb[31].mxu1  ;;  %2026 = vmatmul.mubr.msk.f32.gmra.mrb[28].mxu0 %vm611_vm1, %v946_v10  ;;  %v948_v14 = vmax.f32 %v1974_v11, 0.0 }
 0x1e1   : > { %v947_v13 = vmax.f32 %v844_v12, 0.0 }
 0x1e3   : > { %v1977_v15 = vpop.f32.mrb[32].mxu1  ;;  %2028 = vmatprep.mubr.msk.f32.mxu0 %vm611_vm1, %v947_v13 }
 0x1e4   : > { %v854_v16 = vpop.f32.mrb[33].mxu1  ;;  %2029 = vmatmul.mubr.msk.f32.gmra.mrb[30].mxu0 %vm611_vm1, %v948_v14  ;;  %v950_v18 = vmax.f32 %v1977_v15, 0.0 }
 0x1e5   : > { %v949_v17 = vmax.f32 %v854_v16, 0.0 }
 0x1e7   : > { %v1980_v19 = vpop.f32.mrb[34].mxu1  ;;  %2031 = vmatprep.mubr.msk.f32.mxu0 %vm611_vm1, %v949_v17 }
 0x1e8   : > { %v864_v20 = vpop.f32.mrb[35].mxu1  ;;  %2032 = vmatmul.mubr.msk.f32.gmra.mrb[32].mxu0 %vm611_vm1, %v950_v18  ;;  %v952_v22 = vmax.f32 %v1980_v19, 0.0 }
 0x1e9   : > { %v951_v21 = vmax.f32 %v864_v20, 0.0 }
 0x1eb   : > { %v1983_v23 = vpop.f32.mrb[36].mxu1  ;;  %2034 = vmatprep.mubr.msk.f32.mxu0 %vm611_vm1, %v951_v21 }
 0x1ec   : > { %v874_v24 = vpop.f32.mrb[37].mxu1  ;;  %2035 = vmatmul.mubr.msk.f32.gmra.mrb[34].mxu0 %vm611_vm1, %v952_v22  ;;  %v954_v26 = vmax.f32 %v1983_v23, 0.0 }
 0x1ed   : > { %v953_v25 = vmax.f32 %v874_v24, 0.0 }
 0x1ef   : > { %v1986_v27 = vpop.f32.mrb[38].mxu1  ;;  %2037 = vmatprep.mubr.msk.f32.mxu0 %vm611_vm1, %v953_v25 }
 0x1f0   : > { %v884_v28 = vpop.f32.mrb[39].mxu1  ;;  %2038 = vmatmul.mubr.msk.f32.gmra.mrb[36].mxu0 %vm611_vm1, %v954_v26  ;;  %v956_v30 = vmax.f32 %v1986_v27, 0.0 }
 0x1f1   : > { %v955_v29 = vmax.f32 %v884_v28, 0.0 }
 0x1f3   : > { %v1989_v31 = vpop.f32.mrb[40].mxu1  ;;  %2040 = vmatprep.mubr.msk.f32.mxu0 %vm611_vm1, %v955_v29 }
 0x1f4   : > { %v894_v32 = vpop.f32.mrb[41].mxu1  ;;  %2041 = vmatmul.mubr.msk.f32.gmra.mrb[38].mxu0 %vm611_vm1, %v956_v30  ;;  %v958_v34 = vmax.f32 %v1989_v31, 0.0 }
 0x1f5   : > { %v957_v33 = vmax.f32 %v894_v32, 0.0 }
 0x1f7   : > { %v1992_v35 = vpop.f32.mrb[42].mxu1  ;;  %2043 = vmatprep.mubr.msk.f32.mxu0 %vm611_vm1, %v957_v33 }
 0x1f8   : > { %v904_v36 = vpop.f32.mrb[43].mxu1  ;;  %2044 = vmatmul.mubr.msk.f32.gmra.mrb[40].mxu0 %vm611_vm1, %v958_v34  ;;  %v960_v38 = vmax.f32 %v1992_v35, 0.0 }
 0x1f9   : > { %v959_v37 = vmax.f32 %v904_v36, 0.0 }
 0x1fb   : > { %v1995_v39 = vpop.f32.mrb[44].mxu1  ;;  %2046 = vmatprep.mubr.msk.f32.mxu0 %vm611_vm1, %v959_v37 }
 0x1fc   : > { %v914_v40 = vpop.f32.mrb[45].mxu1  ;;  %2047 = vmatmul.mubr.msk.f32.gmra.mrb[42].mxu0 %vm611_vm1, %v960_v38  ;;  %v962_v42 = vmax.f32 %v1995_v39, 0.0 }
 0x1fd   : > { %v961_v41 = vmax.f32 %v914_v40, 0.0 }
 0x1ff   : > { %v1998_v43 = vpop.f32.mrb[46].mxu1  ;;  %2049 = vmatprep.mubr.msk.f32.mxu0 %vm611_vm1, %v961_v41 }
 0x200   : > { %v924_v44 = vpop.f32.mrb[47].mxu1  ;;  %2050 = vmatmul.mubr.msk.f32.gmra.mrb[44].mxu0 %vm611_vm1, %v962_v42  ;;  %v964_v46 = vmax.f32 %v1998_v43, 0.0 }
 0x201   : > { %v963_v45 = vmax.f32 %v924_v44, 0.0 }
 0x203   : > { %2052 = vmatprep.mubr.msk.f32.mxu0 %vm611_vm1, %v963_v45 }
 0x204   : > { %2053 = vmatmul.mubr.msk.f32.gmra.mrb[46].mxu0 %vm611_vm1, %v964_v46 }
 0x29b   : > { %v2009_v47 = vpop.f32.mrb[16].mxu0 }
 0x29c   : > { %1292 = vst.msk [vmem:[%s2476_s7 + $0x8] sm:$0xff] %vm1290_vm2, %v2009_v47  ;;  %v1131_v48 = vpop.f32.mrb[17].mxu0 }
 0x29d   : > { %1291 = vst.msk [vmem:[%s2476_s7] sm:$0xff] %vm1290_vm2, %v1131_v48 }
 0x29f   : > { %v2012_v49 = vpop.f32.mrb[18].mxu0 }
 0x2a0   : > { %1294 = vst.msk [vmem:[%s2476_s7 + $0x18] sm:$0xff] %vm1290_vm2, %v2012_v49  ;;  %v1141_v50 = vpop.f32.mrb[19].mxu0 }
 0x2a1   : > { %1293 = vst.msk [vmem:[%s2476_s7 + $0x10] sm:$0xff] %vm1290_vm2, %v1141_v50 }
 0x2a3   : > { %v2015_v51 = vpop.f32.mrb[20].mxu0 }
 0x2a4   : > { %1296 = vst.msk [vmem:[%s2476_s7 + $0x28] sm:$0xff] %vm1290_vm2, %v2015_v51  ;;  %v1151_v52 = vpop.f32.mrb[21].mxu0 }
 0x2a5   : > { %1295 = vst.msk [vmem:[%s2476_s7 + $0x20] sm:$0xff] %vm1290_vm2, %v1151_v52 }
 0x2a7   : > { %v2018_v53 = vpop.f32.mrb[22].mxu0 }
 0x2a8   : > { %1298 = vst.msk [vmem:[%s2476_s7 + $0x38] sm:$0xff] %vm1290_vm2, %v2018_v53  ;;  %v1161_v54 = vpop.f32.mrb[23].mxu0 }
 0x2a9   : > { %1297 = vst.msk [vmem:[%s2476_s7 + $0x30] sm:$0xff] %vm1290_vm2, %v1161_v54 }
 0x2ab   : > { %v2021_v55 = vpop.f32.mrb[24].mxu0 }
 0x2ac   : > { %1300 = vst.msk [vmem:[%s2476_s7 + $0x48] sm:$0xff] %vm1290_vm2, %v2021_v55  ;;  %v1171_v56 = vpop.f32.mrb[25].mxu0 }
 0x2ad   : > { %1299 = vst.msk [vmem:[%s2476_s7 + $0x40] sm:$0xff] %vm1290_vm2, %v1171_v56 }
 0x2af   : > { %v2024_v57 = vpop.f32.mrb[26].mxu0 }
 0x2b0   : > { %1302 = vst.msk [vmem:[%s2476_s7 + $0x58] sm:$0xff] %vm1290_vm2, %v2024_v57  ;;  %v1181_v58 = vpop.f32.mrb[27].mxu0 }
 0x2b1   : > { %1301 = vst.msk [vmem:[%s2476_s7 + $0x50] sm:$0xff] %vm1290_vm2, %v1181_v58 }
 0x2b3   : > { %v2027_v59 = vpop.f32.mrb[28].mxu0 }
 0x2b4   : > { %1304 = vst.msk [vmem:[%s2476_s7 + $0x68] sm:$0xff] %vm1290_vm2, %v2027_v59  ;;  %v1191_v60 = vpop.f32.mrb[29].mxu0 }
 0x2b5   : > { %1303 = vst.msk [vmem:[%s2476_s7 + $0x60] sm:$0xff] %vm1290_vm2, %v1191_v60 }
 0x2b7   : > { %v2030_v61 = vpop.f32.mrb[30].mxu0 }
 0x2b8   : > { %1306 = vst.msk [vmem:[%s2476_s7 + $0x78] sm:$0xff] %vm1290_vm2, %v2030_v61  ;;  %v1201_v62 = vpop.f32.mrb[31].mxu0 }
 0x2b9   : > { %1305 = vst.msk [vmem:[%s2476_s7 + $0x70] sm:$0xff] %vm1290_vm2, %v1201_v62 }
 0x2bb   : > { %v2033_v63 = vpop.f32.mrb[32].mxu0 }
 0x2bc   : > { %1308 = vst.msk [vmem:[%s2476_s7 + $0x88] sm:$0xff] %vm1290_vm2, %v2033_v63  ;;  %v1211_v0 = vpop.f32.mrb[33].mxu0 }
 0x2bd   : > { %1307 = vst.msk [vmem:[%s2476_s7 + $0x80] sm:$0xff] %vm1290_vm2, %v1211_v0 }
 0x2bf   : > { %v2036_v1 = vpop.f32.mrb[34].mxu0 }
 0x2c0   : > { %1310 = vst.msk [vmem:[%s2476_s7 + $0x98] sm:$0xff] %vm1290_vm2, %v2036_v1  ;;  %v1221_v2 = vpop.f32.mrb[35].mxu0 }
 0x2c1   : > { %1309 = vst.msk [vmem:[%s2476_s7 + $0x90] sm:$0xff] %vm1290_vm2, %v1221_v2 }
 0x2c3   : > { %v2039_v3 = vpop.f32.mrb[36].mxu0 }
 0x2c4   : > { %1312 = vst.msk [vmem:[%s2476_s7 + $0xa8] sm:$0xff] %vm1290_vm2, %v2039_v3  ;;  %v1231_v4 = vpop.f32.mrb[37].mxu0 }
 0x2c5   : > { %1311 = vst.msk [vmem:[%s2476_s7 + $0xa0] sm:$0xff] %vm1290_vm2, %v1231_v4 }
 0x2c7   : > { %v2042_v5 = vpop.f32.mrb[38].mxu0 }
 0x2c8   : > { %1314 = vst.msk [vmem:[%s2476_s7 + $0xb8] sm:$0xff] %vm1290_vm2, %v2042_v5  ;;  %v1241_v6 = vpop.f32.mrb[39].mxu0 }
 0x2c9   : > { %1313 = vst.msk [vmem:[%s2476_s7 + $0xb0] sm:$0xff] %vm1290_vm2, %v1241_v6 }
 0x2cb   : > { %v2045_v7 = vpop.f32.mrb[40].mxu0 }
 0x2cc   : > { %1316 = vst.msk [vmem:[%s2476_s7 + $0xc8] sm:$0xff] %vm1290_vm2, %v2045_v7  ;;  %v1251_v8 = vpop.f32.mrb[41].mxu0 }
 0x2cd   : > { %1315 = vst.msk [vmem:[%s2476_s7 + $0xc0] sm:$0xff] %vm1290_vm2, %v1251_v8 }
 0x2cf   : > { %v2048_v9 = vpop.f32.mrb[42].mxu0 }
 0x2d0   : > { %1318 = vst.msk [vmem:[%s2476_s7 + $0xd8] sm:$0xff] %vm1290_vm2, %v2048_v9  ;;  %v1261_v10 = vpop.f32.mrb[43].mxu0 }
 0x2d1   : > { %1317 = vst.msk [vmem:[%s2476_s7 + $0xd0] sm:$0xff] %vm1290_vm2, %v1261_v10 }
 0x2d3   : > { %v2051_v11 = vpop.f32.mrb[44].mxu0  ;;  %1329 = sbr.rel (!%p2303_p4) target bundleno = 786 (0x312), region = 40 }
 0x2d4   : > { %1320 = vst.msk [vmem:[%s2476_s7 + $0xe8] sm:$0xff] %vm1290_vm2, %v2051_v11  ;;  %v1271_v12 = vpop.f32.mrb[45].mxu0 }
 0x2d5   : > { %1319 = vst.msk [vmem:[%s2476_s7 + $0xe0] sm:$0xff] %vm1290_vm2, %v1271_v12 }
 0x2d7   : > { %v2054_v13 = vpop.f32.mrb[46].mxu0 }
 0x2d8   : > { %1322 = vst.msk [vmem:[%s2476_s7 + $0xf8] sm:$0xff] %vm1290_vm2, %v2054_v13  ;;  %v1281_v14 = vpop.f32.mrb[47].mxu0 }
 0x2d9   : > { %1321 = vst.msk [vmem:[%s2476_s7 + $0xf0] sm:$0xff] %vm1290_vm2, %v1281_v14 }
 0x2da   : > { %s2696_s15 = smov (!%p1332_p8, %s1331_s15), 32 }
 0x2db   : > { %s1767_s12 = sshll.u32 %s2696_s15, 7 }
 0x2dc   : > { %p1770_p9 = scmp.eq.s32.totalorder %s1767_s12, 0 }
 0x2dd   : > { %s2555_s13 = sshrl.u32 (!%p1770_p9), %s2696_s15, 5 }
 0x2de   : > { %1340 = sbr.rel (%p1770_p9) target bundleno = 786 (0x312), region = 44  ;;  %p1771_p10 = scmp.le.s32.totalorder (!%p1770_p9), %s2555_s13, 0 }
 0x2e5   : > { %1618 = sbr.rel (%p1771_p10) target bundleno = 765 (0x2fd), region = 120  ;;  %s2687_s18 = smov (!%p1771_p10), %s2549_s11 }
 0x2e6   : > { %s2688_s23 = smov (!%p1771_p10), %s2476_s7  ;;  %s2564_s28 = smov (!%p1771_p10), 0  }
 0x2e7   : > { %s2566_s14 = smov (!%p1771_p10), 0  }
 0x2ec LB: >> { %v1464_v15 = vld [vmem:[%s2227_s23] sm:$0xff]  ;;  %v1466_v16 = vld [vmem:[%s2227_s23 + $0x8] sm:$0xff]  ;;  %v1468_v17 = vld [vmem:[%s2227_s23 + $0x10] sm:$0xff]  ;;  %s1528_s17 = sadd.s32 1, %s2231_s28  ;;  %s1458_s14 = sadd.s32 1, %s2235_s14   ;;  %s2235_s14 = sphi %s2566_s14, %s1458_s14   ;;  %s2231_s28 = sphi %s2564_s28, %s2691_s28   ;;  %s2227_s23 = sphi %s2688_s23, %s2690_s23   ;;  %s2223_s18 = sphi %s2687_s18, %s2689_s18  }
 0x2ed   : >> { %1465 = vst [vmem:[%s2223_s18] sm:$0xff] %v1464_v15  ;;  %1467 = vst [vmem:[%s2223_s18 + $0x8] sm:$0xff] %v1466_v16  ;;  %v1470_v18 = vld [vmem:[%s2227_s23 + $0x18] sm:$0xff]  ;;  %v1472_v19 = vld [vmem:[%s2227_s23 + $0x20] sm:$0xff]  ;;  %p1529_p11 = scmp.ge.s32.totalorder %s1528_s17, %s2555_s13  ;;  %p1457_p12 = scmp.ge.s32.totalorder %s1458_s14, %s2555_s13 }
 0x2ee   : >> { %1469 = vst [vmem:[%s2223_s18 + $0x10] sm:$0xff] %v1468_v17  ;;  %v1474_v20 = vld [vmem:[%s2227_s23 + $0x28] sm:$0xff]  ;;  %1471 = vst [vmem:[%s2223_s18 + $0x18] sm:$0xff] %v1470_v18  ;;  %v1476_v21 = vld [vmem:[%s2227_s23 + $0x30] sm:$0xff] }
 0x2ef   : >> { %1473 = vst [vmem:[%s2223_s18 + $0x20] sm:$0xff] %v1472_v19  ;;  %1475 = vst [vmem:[%s2223_s18 + $0x28] sm:$0xff] %v1474_v20  ;;  %v1478_v22 = vld [vmem:[%s2227_s23 + $0x38] sm:$0xff]  ;;  %v1480_v23 = vld [vmem:[%s2227_s23 + $0x40] sm:$0xff]  ;;  %s2698_s17 = smov (%p1529_p11, %s1528_s17), 0 }
 0x2f0   : >> { %1477 = vst [vmem:[%s2223_s18 + $0x30] sm:$0xff] %v1476_v21  ;;  %1479 = vst [vmem:[%s2223_s18 + $0x38] sm:$0xff] %v1478_v22  ;;  %v1482_v24 = vld [vmem:[%s2227_s23 + $0x48] sm:$0xff]  ;;  %v1484_v25 = vld [vmem:[%s2227_s23 + $0x50] sm:$0xff]  ;;  %s1772_s20 = sshll.u32 %s2698_s17, 8  ;;  %s2691_s28 = smov %s2698_s17 }
 0x2f1   : >> { %1481 = vst [vmem:[%s2223_s18 + $0x40] sm:$0xff] %v1480_v23  ;;  %v1486_v26 = vld [vmem:[%s2227_s23 + $0x58] sm:$0xff]  ;;  %1483 = vst [vmem:[%s2223_s18 + $0x48] sm:$0xff] %v1482_v24  ;;  %v1488_v27 = vld [vmem:[%s2227_s23 + $0x60] sm:$0xff]  ;;  %s2622_s21 = scalar_lea.vmem %s2476_s7, %s1772_s20 [#allocation2]   ;;  %s1534_s24 = scalar_lea.vmem %s2549_s11, %s1772_s20  }
 0x2f2   : >> { %1485 = vst [vmem:[%s2223_s18 + $0x50] sm:$0xff] %v1484_v25  ;;  %1487 = vst [vmem:[%s2223_s18 + $0x58] sm:$0xff] %v1486_v26  ;;  %v1490_v28 = vld [vmem:[%s2227_s23 + $0x68] sm:$0xff]  ;;  %v1492_v29 = vld [vmem:[%s2227_s23 + $0x70] sm:$0xff] }
 0x2f3   : >> { %1489 = vst [vmem:[%s2223_s18 + $0x60] sm:$0xff] %v1488_v27  ;;  %1491 = vst [vmem:[%s2223_s18 + $0x68] sm:$0xff] %v1490_v28  ;;  %v1494_v30 = vld [vmem:[%s2227_s23 + $0x78] sm:$0xff]  ;;  %v1496_v31 = vld [vmem:[%s2227_s23 + $0x80] sm:$0xff] }
 0x2f4   : >> { %1493 = vst [vmem:[%s2223_s18 + $0x70] sm:$0xff] %v1492_v29  ;;  %v1498_v32 = vld [vmem:[%s2227_s23 + $0x88] sm:$0xff]  ;;  %1495 = vst [vmem:[%s2223_s18 + $0x78] sm:$0xff] %v1494_v30  ;;  %v1500_v33 = vld [vmem:[%s2227_s23 + $0x90] sm:$0xff] }
 0x2f5   : >> { %1497 = vst [vmem:[%s2223_s18 + $0x80] sm:$0xff] %v1496_v31  ;;  %1499 = vst [vmem:[%s2223_s18 + $0x88] sm:$0xff] %v1498_v32  ;;  %v1502_v34 = vld [vmem:[%s2227_s23 + $0x98] sm:$0xff]  ;;  %v1504_v35 = vld [vmem:[%s2227_s23 + $0xa0] sm:$0xff] }
 0x2f6   : >> { %1501 = vst [vmem:[%s2223_s18 + $0x90] sm:$0xff] %v1500_v33  ;;  %1503 = vst [vmem:[%s2223_s18 + $0x98] sm:$0xff] %v1502_v34  ;;  %v1506_v36 = vld [vmem:[%s2227_s23 + $0xa8] sm:$0xff]  ;;  %v1508_v37 = vld [vmem:[%s2227_s23 + $0xb0] sm:$0xff]  ;;  %1460 = sbr.rel (!%p1457_p12) target bundleno = 748 (0x2ec), region = 126 }
 0x2f7   : >> { %1505 = vst [vmem:[%s2223_s18 + $0xa0] sm:$0xff] %v1504_v35  ;;  %v1510_v38 = vld [vmem:[%s2227_s23 + $0xb8] sm:$0xff]  ;;  %1507 = vst [vmem:[%s2223_s18 + $0xa8] sm:$0xff] %v1506_v36  ;;  %v1512_v39 = vld [vmem:[%s2227_s23 + $0xc0] sm:$0xff] }
 0x2f8   : >> { %1509 = vst [vmem:[%s2223_s18 + $0xb0] sm:$0xff] %v1508_v37  ;;  %1511 = vst [vmem:[%s2223_s18 + $0xb8] sm:$0xff] %v1510_v38  ;;  %v1514_v40 = vld [vmem:[%s2227_s23 + $0xc8] sm:$0xff]  ;;  %v1516_v41 = vld [vmem:[%s2227_s23 + $0xd0] sm:$0xff] }
 0x2f9   : >> { %1513 = vst [vmem:[%s2223_s18 + $0xc0] sm:$0xff] %v1512_v39  ;;  %1515 = vst [vmem:[%s2223_s18 + $0xc8] sm:$0xff] %v1514_v40  ;;  %v1518_v42 = vld [vmem:[%s2227_s23 + $0xd8] sm:$0xff]  ;;  %v1520_v43 = vld [vmem:[%s2227_s23 + $0xe0] sm:$0xff] }
 0x2fa   : >> { %1517 = vst [vmem:[%s2223_s18 + $0xd0] sm:$0xff] %v1516_v41  ;;  %v1522_v44 = vld [vmem:[%s2227_s23 + $0xe8] sm:$0xff]  ;;  %1519 = vst [vmem:[%s2223_s18 + $0xd8] sm:$0xff] %v1518_v42  ;;  %v1524_v45 = vld [vmem:[%s2227_s23 + $0xf0] sm:$0xff] }
 0x2fb   : >> { %1521 = vst [vmem:[%s2223_s18 + $0xe0] sm:$0xff] %v1520_v43  ;;  %1523 = vst [vmem:[%s2223_s18 + $0xe8] sm:$0xff] %v1522_v44  ;;  %v1526_v46 = vld [vmem:[%s2227_s23 + $0xf8] sm:$0xff]  ;;  %s2690_s23 = smov %s2622_s21 }
 0x2fc   : >> { %1525 = vst [vmem:[%s2223_s18 + $0xf0] sm:$0xff] %v1524_v45  ;;  %1527 = vst [vmem:[%s2223_s18 + $0xf8] sm:$0xff] %v1526_v46  ;;  %s2689_s18 = smov %s1534_s24 }
 0x2fd PF: > { %s2663_s25 = sand.u32 31, %s2696_s15   ;;  %s1783_s26 = sshll.u32 %s2555_s13, 8 }
 0x2fe   : > { %s1539_s27 = scalar_lea.vmem %s2476_s7, %s1783_s26 [#allocation2]   ;;  %s1541_s29 = scalar_lea.vmem %s2549_s11, %s1783_s26  }
 0x2ff   : > { %p1777_p13 = scmp.le.s32.totalorder %s2663_s25, 0 }
 0x300   : > { %s2237_s30 = smov (!%p1777_p13), %s1541_s29   ;;  %s2241_s5 = smov (!%p1777_p13), %s1539_s27  }
 0x301   : > { %1632 = sbr.rel (%p1777_p13) target bundleno = 786 (0x312), region = 131  ;;  %s2245_s6 = smov (!%p1777_p13), 0  }
 0x302   : > { %s2249_s8 = smov (!%p1777_p13), 0  }
 0x308 LB: >> { %v1551_v47 = vld [vmem:[%s2243_s5] sm:$0xff]  ;;  %s1553_s15 = sadd.s32 1, %s2247_s6  ;;  %s1545_s8 = sadd.s32 1, %s2251_s8   ;;  %s2251_s8 = sphi %s2249_s8, %s1545_s8   ;;  %s2247_s6 = sphi %s2245_s6, %s2246_s6   ;;  %s2243_s5 = sphi %s2241_s5, %s1558_s5   ;;  %s2239_s30 = sphi %s2237_s30, %s1559_s30  }
 0x309   : >> { %1552 = vst [vmem:[%s2239_s30] sm:$0xff] %v1551_v47  ;;  %p1554_p0 = scmp.ge.s32.totalorder %s1553_s15, %s2663_s25  ;;  %p1544_p1 = scmp.ge.s32.totalorder %s1545_s8, %s2663_s25 }
 0x30b   : >> { %s2700_s15 = smov (%p1554_p0, %s1553_s15), 0  ;;  %1547 = sbr.rel (!%p1544_p1) target bundleno = 776 (0x308), region = 137 }
 0x30c   : >> { %s1778_s7 = sshll.u32 %s2700_s15, 3  ;;  %s2246_s6 = smov %s2700_s15  }
 0x30d   : >> { %s1558_s5 = scalar_lea.vmem %s1539_s27, %s1778_s7 [#allocation2]   ;;  %s1559_s30 = scalar_lea.vmem %s1541_s29, %s1778_s7  }
 0x312 PF: > { %p11_p2 = scmp.ge.s32.totalorder %s2293_s19, 4   ;;  %s2692_s15 = smov %s2215_s16 }
 0x313   : > { %s2693_s16 = smov %s2301_s22  ;;  %s2694_s17 = smov %s2293_s19 }
 0x314   :  { %13 = sbr.rel (!%p11_p2) target bundleno = 2 (0x2), region = 148 }

</bundles_post_ra>
